<compile_context>
chip_gen: v7x
topology: tpu7x:2x2x1
jax: 0.10.0
libtpu: 0.0.40
codegen_flags: <defaults>
</compile_context>

<pallas_src>
import functools

import jax
import jax.numpy as jnp
from jax.experimental import pallas as pl
from jax.experimental.pallas import tpu as pltpu


# Safe everywhere among v5e/v6e/v7x (>= the 16 MiB v5e scoped default, <= the ~48 MiB
# cap advised for v7x).  Actual per-step usage at these shapes is well under 1 MiB.
_VMEM_LIMIT = 32 * 1024 * 1024


# ----------------------------------------------------------------------------------
# Pallas kernel: one output row of a stride-1 (kc x kc) conv, taps sliced from the
# VMEM-resident padded image, per-tap MXU dots accumulated in f32, fused
# BN-shift + ReLU epilogue, optional fused residual add (+ block-level ReLU).
# ----------------------------------------------------------------------------------
def _bnconv_row_kernel(x_ref, w_ref, shift_ref, *rest, fuse_residual, relu_after_add):
    if fuse_residual:
        res_ref, out_ref = rest
    else:
        (out_ref,) = rest

    kh, kw, _, cout = w_ref.shape          # weight resident: (kc, kc, cin_eff, cout)
    wo = out_ref.shape[2]                  # output row width
    row0 = pl.program_id(1)                # which output row of this image

    # One VMEM read of the kc input rows this output row needs (dynamic start on a
    # non-minor dim = plain addressing).
    slab = x_ref[0, pl.ds(row0, kh), :, :]                     # (kc, cells_w, cin) bf16

    acc = jnp.zeros((wo, cout), jnp.float32)
    for dy in range(kh):
        row = slab[dy]                                         # (cells_w, cin)
        for dx in range(kw):
            acc = acc + jnp.dot(row[dx:dx + wo, :], w_ref[dy, dx],
                                preferred_element_type=jnp.float32)

    y = jnp.maximum(acc + shift_ref[...], 0.0)                 # folded BN + BNConv ReLU
    if fuse_residual:
        y = y + res_ref[0, 0].astype(jnp.float32)              # main + side
        if relu_after_add:
            y = jnp.maximum(y, 0.0)                            # block-level ReLU
    out_ref[0, 0] = y.astype(out_ref.dtype)


def _bnconv_pallas(xcells, w_folded, shift, *, ho, wo, residual=None,
                   relu_after_add=True, out_dtype=jnp.bfloat16):
    """xcells: (N, cells_h, cells_w, cin_eff) bf16 padded (+space-to-depth) activation.
    w_folded: (kc, kc, cin_eff, cout) bf16, BN scale folded in.  shift: (1, cout) f32.
    residual: optional (N, ho, wo, cout) bf16 fused into the epilogue."""
    n, ch, cw, cin = xcells.shape
    kh, kw, wcin, cout = w_folded.shape
    assert wcin == cin and kh == kw and ch >= ho + kh - 1 and cw >= wo + kw - 1

    fuse = residual is not None
    kernel = functools.partial(_bnconv_row_kernel, fuse_residual=fuse,
                               relu_after_add=relu_after_add)

    in_specs = [
        # Whole padded image resident per image (re-fetched only when n changes).
        pl.BlockSpec((1, ch, cw, cin), lambda n_, y_: (n_, 0, 0, 0)),
        # Full weight / shift resident across the whole grid (constant index map).
        pl.BlockSpec((kh, kw, cin, cout), lambda n_, y_: (0, 0, 0, 0)),
        pl.BlockSpec((1, cout), lambda n_, y_: (0, 0)),
    ]
    args = [xcells, w_folded, shift]
    if fuse:
        in_specs.append(pl.BlockSpec((1, 1, wo, cout), lambda n_, y_: (n_, y_, 0, 0)))
        args.append(residual)

    return pl.pallas_call(
        kernel,
        out_shape=jax.ShapeDtypeStruct((n, ho, wo, cout), out_dtype),
        grid=(n, ho),
        in_specs=in_specs,
        out_specs=pl.BlockSpec((1, 1, wo, cout), lambda n_, y_: (n_, y_, 0, 0)),
        compiler_params=pltpu.CompilerParams(
            dimension_semantics=("parallel", "parallel"),
            vmem_limit_bytes=_VMEM_LIMIT),
    )(*args)


# ----------------------------------------------------------------------------------
# Wrapper-side preprocessing: spatial pad (+1 halo) and, for stride>1, a space-to-depth
# transform so the kernel only runs stride-1 contiguous tap windows.  Single ~1x pass.
# ----------------------------------------------------------------------------------
def _prep_input(x_nhwc, stride):
    n, h, w, c = x_nhwc.shape
    s = stride
    ho, wo = (h - 1) // s + 1, (w - 1) // s + 1
    kc = (3 - 1) // s + 1                          # cell-window size after s2d
    hp, wp = s * (ho + kc - 1), s * (wo + kc - 1)
    xp = jnp.pad(x_nhwc, ((0, 0), (1, max(hp - h - 1, 0)),
                          (1, max(wp - w - 1, 0)), (0, 0)))
    xp = xp[:, :hp, :wp, :]
    if s > 1:
        xp = xp.reshape(n, hp // s, s, wp // s, s, c)
        xp = xp.transpose(0, 1, 3, 2, 4, 5).reshape(n, hp // s, wp // s, s * s * c)
    return xp, ho, wo


def _fold_weight(w_hwio, scale, stride):
    """3x3 HWIO weight -> (kc, kc, s*s*Cin, Cout) bf16 weight matching _prep_input's
    space-to-depth channel order (row-parity, col-parity, cin), BN scale folded in."""
    kh, kw, ci, co = w_hwio.shape
    s = stride
    kc = (kh - 1) // s + 1
    wf = w_hwio.astype(jnp.float32) * scale.reshape(1, 1, 1, co).astype(jnp.float32)
    w2 = jnp.zeros((kc, kc, s, s, ci, co), jnp.float32)
    for dy in range(kh):
        for dx in range(kw):
            w2 = w2.at[dy // s, dx // s, dy % s, dx % s].set(wf[dy, dx])
    return w2.reshape(kc, kc, s * s * ci, co).astype(jnp.bfloat16)


def _shift_row(shift):
    return shift.reshape(1, -1).astype(jnp.float32)


# ----------------------------------------------------------------------------------
# ResidualBlock forward (matches the PyTorch module's forward semantics).
# ----------------------------------------------------------------------------------
def residual_block_forward(x_nchw, params, *, stride=2, relu_after_add=True):
    if stride <= 1:
        # Faithful to the module's literal forward(): when downsample is False the
        # main/side branches are never applied; x passes through (+ optional ReLU).
        return jnp.maximum(x_nchw, 0.0) if relu_after_add else x_nchw

    x = jnp.transpose(x_nchw, (0, 2, 3, 1)).astype(jnp.bfloat16)   # NCHW -> NHWC, bf16
    main = params["main"]
    assert len(main) >= 2
    w_side, sc_side, sh_side = params["side"]

    # ---- side conv + main conv 0 share the same padded / space-to-depth input.
    xc, ho, wo = _prep_input(x, stride)
    side = _bnconv_pallas(xc, _fold_weight(w_side, sc_side, stride),
                          _shift_row(sh_side), ho=ho, wo=wo)        # (N,ho,wo,outc) bf16
    w0, sc0, sh0 = main[0]
    h = _bnconv_pallas(xc, _fold_weight(w0, sc0, stride),
                       _shift_row(sh0), ho=ho, wo=wo)               # bf16

    # ---- remaining main layers (stride 1); the last fuses `+ side` and the block ReLU.
    for li in range(1, len(main)):
        w, sc, sh = main[li]
        xc, ho, wo = _prep_input(h, 1)
        last = li == len(main) - 1
        h = _bnconv_pallas(
            xc, _fold_weight(w, sc, 1), _shift_row(sh), ho=ho, wo=wo,
            residual=side if last else None,
            relu_after_add=relu_after_add,
            out_dtype=jnp.float32 if last else jnp.bfloat16)

    return jnp.transpose(h, (0, 3, 1, 2))                           # NHWC -> NCHW


# ----------------------------------------------------------------------------------
# Deterministic parameter init (synthetic; BN folded to scale/shift, eval mode).
# ----------------------------------------------------------------------------------
def init_params(key, inc, outc, *, num_conv=2, expansion=4, eps=1e-5):
    oc_convi = outc // expansion
    chans = [(inc, oc_convi)] + [(oc_convi, oc_convi)] * (num_conv - 2) + [(oc_convi, outc)]

    def conv_w(k, ci, co):
        return jax.random.normal(k, (3, 3, ci, co), jnp.float32) / jnp.sqrt(9.0 * ci)

    def bn_affine(k, c):
        kg, kb, km, kv = jax.random.split(k, 4)
        gamma = 1.0 + 0.1 * jax.random.normal(kg, (c,), jnp.float32)
        beta = 0.1 * jax.random.normal(kb, (c,), jnp.float32)
        mean = 0.1 * jax.random.normal(km, (c,), jnp.float32)
        var = 0.5 + jax.random.uniform(kv, (c,), jnp.float32)
        scale = gamma / jnp.sqrt(var + eps)
        shift = beta - mean * scale
        return scale, shift

    keys = jax.random.split(key, 2 * (num_conv + 1))
    main = []
    for i, (ci, co) in enumerate(chans):
        w = conv_w(keys[2 * i], ci, co)
        sc, sh = bn_affine(keys[2 * i + 1], co)
        main.append((w, sc, sh))
    ws = conv_w(keys[-2], inc, outc)
    scs, shs = bn_affine(keys[-1], outc)
    return {"main": main, "side": (ws, scs, shs)}


# ----------------------------------------------------------------------------------
# Pure-JAX reference mirroring the kernel's bf16-inference numerics exactly
# (bf16 conv operands with folded scale, f32 accumulation, bf16 inter-layer acts).
# ----------------------------------------------------------------------------------
def _bnconv_ref(x, w, scale, shift, stride):
    wf = (w.astype(jnp.float32) * scale.reshape(1, 1, 1, -1)).astype(jnp.bfloat16)
    y = jax.lax.conv_general_dilated(
        x.astype(jnp.bfloat16), wf, window_strides=(stride, stride),
        padding=((1, 1), (1, 1)), dimension_numbers=("NHWC", "HWIO", "NHWC"),
        preferred_element_type=jnp.float32)
    return jnp.maximum(y + shift.reshape(1, 1, 1, -1).astype(jnp.float32), 0.0)


def residual_block_ref(x_nhwc, params, *, stride=2, relu_after_add=True):
    side = _bnconv_ref(x_nhwc, *params["side"], stride)
    h = x_nhwc
    for li, (w, sc, sh) in enumerate(params["main"]):
        st = stride if li == 0 else 1
        h = _bnconv_ref(h.astype(jnp.bfloat16), w, sc, sh, st)
    out = h + side.astype(jnp.bfloat16).astype(jnp.float32)   # side fed to kernel as bf16
    return jnp.maximum(out, 0.0) if relu_after_add else out


if __name__ == "__main__":
    key = jax.random.PRNGKey(0)
    kx, kp = jax.random.split(key)

    # Small, module-consistent shapes: N=2, inc=8, H=W=16, outc=32, expansion=4, stride=2.
    N, C, H, W = 2, 8, 16, 16
    outc, stride = 32, 2

    x = jax.random.normal(kx, (N, C, H, W), jnp.float32)          # NCHW, like PyTorch
    params = init_params(kp, C, outc, num_conv=2, expansion=4)

    fwd = jax.jit(functools.partial(residual_block_forward,
                                    stride=stride, relu_after_add=True))
    out = jax.block_until_ready(fwd(x, params))

    assert out.shape == (N, outc, H // stride, W // stride), out.shape

    ref = residual_block_ref(jnp.transpose(x, (0, 2, 3, 1)), params, stride=stride)
    ref = jnp.transpose(ref, (0, 3, 1, 2))
    max_err = float(jnp.max(jnp.abs(out - ref)))
    assert max_err < 1e-2, f"max abs err too large: {max_err}"

    print("KERNEL_OK")
</pallas_src>

<mosaic_0001>
module attributes {stable_mosaic.version = 11 : i64} {
  func.func @_bnconv_row_kernel(%arg0: i32, %arg1: i32, %arg2: memref<1x9x9x32xbf16, #tpu.memory_space<vmem>>, %arg3: memref<2x2x32x8xbf16, #tpu.memory_space<vmem>>, %arg4: memref<1x8xf32, #tpu.memory_space<vmem>>, %arg5: memref<1x1x8x8xbf16, #tpu.memory_space<vmem>>) attributes {dimension_semantics = [#tpu.dimension_semantics<parallel>, #tpu.dimension_semantics<parallel>], iteration_bounds = array<i64: 2, 8>, scalar_prefetch = 0 : i64, scratch_operands = 0 : i64, tpu.core_type = #tpu.core_type<tc>, window_params = [{transform_indices = @transform_0, window_bounds = array<i64: 1, 9, 9, 32>}, {pipeline_mode = #tpu.pipeline_mode<synchronous>, transform_indices = @transform_1, window_bounds = array<i64: 2, 2, 32, 8>}, {pipeline_mode = #tpu.pipeline_mode<synchronous>, transform_indices = @transform_2, window_bounds = array<i64: 1, 8>}, {transform_indices = @transform_3, window_bounds = array<i64: 1, 1, 8, 8>}]} {
    %c0 = arith.constant 0 : index
    %0 = arith.index_cast %arg1 : i32 to index
    %c0_0 = arith.constant 0 : index
    %c0_1 = arith.constant 0 : index
    %1 = vector.load %arg2[%c0, %0, %c0_0, %c0_1] : memref<1x9x9x32xbf16, #tpu.memory_space<vmem>>, vector<1x2x9x32xbf16>
    %2 = vector.shape_cast %1 : vector<1x2x9x32xbf16> to vector<2x9x32xbf16>
    %cst = arith.constant 0.000000e+00 : f32
    %3 = vector.broadcast %cst : f32 to vector<8x8xf32>
    %4 = vector.extract_strided_slice %2 {offsets = [0, 0, 0], sizes = [1, 9, 32], strides = [1, 1, 1]} : vector<2x9x32xbf16> to vector<1x9x32xbf16>
    %5 = vector.shape_cast %4 : vector<1x9x32xbf16> to vector<9x32xbf16>
    %6 = vector.extract_strided_slice %5 {offsets = [0, 0], sizes = [8, 32], strides = [1, 1]} : vector<9x32xbf16> to vector<8x32xbf16>
    %c0_2 = arith.constant 0 : index
    %c0_3 = arith.constant 0 : index
    %c0_4 = arith.constant 0 : index
    %c0_5 = arith.constant 0 : index
    %7 = vector.load %arg3[%c0_2, %c0_3, %c0_4, %c0_5] : memref<2x2x32x8xbf16, #tpu.memory_space<vmem>>, vector<1x1x32x8xbf16>
    %8 = vector.shape_cast %7 : vector<1x1x32x8xbf16> to vector<32x8xbf16>
    %cst_6 = arith.constant dense<0.000000e+00> : vector<8x8xf32>
    %9 = tpu.matmul %6, %8, %cst_6 {dimension_numbers = #tpu.dot_dimension_numbers<[1], [0], [0], [1], [0, 0, 1, 1], [], []>} : vector<8x32xbf16>, vector<32x8xbf16>, vector<8x8xf32> -> vector<8x8xf32>
    %10 = arith.addf %3, %9 : vector<8x8xf32>
    %11 = vector.extract_strided_slice %5 {offsets = [1, 0], sizes = [8, 32], strides = [1, 1]} : vector<9x32xbf16> to vector<8x32xbf16>
    %c0_7 = arith.constant 0 : index
    %c1 = arith.constant 1 : index
    %c0_8 = arith.constant 0 : index
    %c0_9 = arith.constant 0 : index
    %12 = vector.load %arg3[%c0_7, %c1, %c0_8, %c0_9] : memref<2x2x32x8xbf16, #tpu.memory_space<vmem>>, vector<1x1x32x8xbf16>
    %13 = vector.shape_cast %12 : vector<1x1x32x8xbf16> to vector<32x8xbf16>
    %cst_10 = arith.constant dense<0.000000e+00> : vector<8x8xf32>
    %14 = tpu.matmul %11, %13, %cst_10 {dimension_numbers = #tpu.dot_dimension_numbers<[1], [0], [0], [1], [0, 0, 1, 1], [], []>} : vector<8x32xbf16>, vector<32x8xbf16>, vector<8x8xf32> -> vector<8x8xf32>
    %15 = arith.addf %10, %14 : vector<8x8xf32>
    %16 = vector.extract_strided_slice %2 {offsets = [1, 0, 0], sizes = [1, 9, 32], strides = [1, 1, 1]} : vector<2x9x32xbf16> to vector<1x9x32xbf16>
    %17 = vector.shape_cast %16 : vector<1x9x32xbf16> to vector<9x32xbf16>
    %18 = vector.extract_strided_slice %17 {offsets = [0, 0], sizes = [8, 32], strides = [1, 1]} : vector<9x32xbf16> to vector<8x32xbf16>
    %c1_11 = arith.constant 1 : index
    %c0_12 = arith.constant 0 : index
    %c0_13 = arith.constant 0 : index
    %c0_14 = arith.constant 0 : index
    %19 = vector.load %arg3[%c1_11, %c0_12, %c0_13, %c0_14] : memref<2x2x32x8xbf16, #tpu.memory_space<vmem>>, vector<1x1x32x8xbf16>
    %20 = vector.shape_cast %19 : vector<1x1x32x8xbf16> to vector<32x8xbf16>
    %cst_15 = arith.constant dense<0.000000e+00> : vector<8x8xf32>
    %21 = tpu.matmul %18, %20, %cst_15 {dimension_numbers = #tpu.dot_dimension_numbers<[1], [0], [0], [1], [0, 0, 1, 1], [], []>} : vector<8x32xbf16>, vector<32x8xbf16>, vector<8x8xf32> -> vector<8x8xf32>
    %22 = arith.addf %15, %21 : vector<8x8xf32>
    %23 = vector.extract_strided_slice %17 {offsets = [1, 0], sizes = [8, 32], strides = [1, 1]} : vector<9x32xbf16> to vector<8x32xbf16>
    %c1_16 = arith.constant 1 : index
    %c1_17 = arith.constant 1 : index
    %c0_18 = arith.constant 0 : index
    %c0_19 = arith.constant 0 : index
    %24 = vector.load %arg3[%c1_16, %c1_17, %c0_18, %c0_19] : memref<2x2x32x8xbf16, #tpu.memory_space<vmem>>, vector<1x1x32x8xbf16>
    %25 = vector.shape_cast %24 : vector<1x1x32x8xbf16> to vector<32x8xbf16>
    %cst_20 = arith.constant dense<0.000000e+00> : vector<8x8xf32>
    %26 = tpu.matmul %23, %25, %cst_20 {dimension_numbers = #tpu.dot_dimension_numbers<[1], [0], [0], [1], [0, 0, 1, 1], [], []>} : vector<8x32xbf16>, vector<32x8xbf16>, vector<8x8xf32> -> vector<8x8xf32>
    %27 = arith.addf %22, %26 : vector<8x8xf32>
    %c0_21 = arith.constant 0 : index
    %c0_22 = arith.constant 0 : index
    %28 = vector.load %arg4[%c0_21, %c0_22] : memref<1x8xf32, #tpu.memory_space<vmem>>, vector<1x8xf32>
    %29 = vector.broadcast %28 : vector<1x8xf32> to vector<8x8xf32>
    %30 = arith.addf %27, %29 : vector<8x8xf32>
    %cst_23 = arith.constant 0.000000e+00 : f32
    %31 = vector.broadcast %cst_23 : f32 to vector<8x8xf32>
    %32 = arith.maximumf %30, %31 : vector<8x8xf32>
    %33 = arith.truncf %32 : vector<8x8xf32> to vector<8x8xbf16>
    %c0_24 = arith.constant 0 : index
    %c0_25 = arith.constant 0 : index
    %c0_26 = arith.constant 0 : index
    %c0_27 = arith.constant 0 : index
    %34 = vector.load %arg5[%c0_24, %c0_25, %c0_26, %c0_27] : memref<1x1x8x8xbf16, #tpu.memory_space<vmem>>, vector<1x1x8x8xbf16>
    %35 = vector.shape_cast %34 : vector<1x1x8x8xbf16> to vector<8x8xbf16>
    %36 = vector.shape_cast %33 : vector<8x8xbf16> to vector<1x1x8x8xbf16>
    tpu.vector_store %arg5[%c0_24, %c0_25, %c0_26, %c0_27], %36 {strides = array<i32>} : memref<1x1x8x8xbf16, #tpu.memory_space<vmem>>, vector<1x1x8x8xbf16>,
    return
  }
  func.func @transform_0(%arg0: i32, %arg1: i32) -> (i32, i32, i32, i32) {
    %c0_i32 = arith.constant 0 : i32
    %c0_i32_0 = arith.constant 0 : i32
    %c0_i32_1 = arith.constant 0 : i32
    %c0_i32_2 = arith.constant 0 : i32
    return %arg0, %c0_i32, %c0_i32_0, %c0_i32_1 : i32, i32, i32, i32
  }
  func.func @transform_1(%arg0: i32, %arg1: i32) -> (i32, i32, i32, i32) {
    %c0_i32 = arith.constant 0 : i32
    %c0_i32_0 = arith.constant 0 : i32
    %c0_i32_1 = arith.constant 0 : i32
    %c0_i32_2 = arith.constant 0 : i32
    %c0_i32_3 = arith.constant 0 : i32
    return %c0_i32, %c0_i32_0, %c0_i32_1, %c0_i32_2 : i32, i32, i32, i32
  }
  func.func @transform_2(%arg0: i32, %arg1: i32) -> (i32, i32) {
    %c0_i32 = arith.constant 0 : i32
    %c0_i32_0 = arith.constant 0 : i32
    %c0_i32_1 = arith.constant 0 : i32
    return %c0_i32, %c0_i32_0 : i32, i32
  }
  func.func @transform_3(%arg0: i32, %arg1: i32) -> (i32, i32, i32, i32) {
    %c0_i32 = arith.constant 0 : i32
    %c0_i32_0 = arith.constant 0 : i32
    %c0_i32_1 = arith.constant 0 : i32
    return %arg0, %arg1, %c0_i32, %c0_i32_0 : i32, i32, i32, i32
  }
}

module attributes {stable_mosaic.version = 11 : i64} {
  func.func @_bnconv_row_kernel(%arg0: i32, %arg1: i32, %arg2: memref<1x9x9x32xbf16, #tpu.memory_space<vmem>>, %arg3: memref<2x2x32x32xbf16, #tpu.memory_space<vmem>>, %arg4: memref<1x32xf32, #tpu.memory_space<vmem>>, %arg5: memref<1x1x8x32xbf16, #tpu.memory_space<vmem>>) attributes {dimension_semantics = [#tpu.dimension_semantics<parallel>, #tpu.dimension_semantics<parallel>], iteration_bounds = array<i64: 2, 8>, scalar_prefetch = 0 : i64, scratch_operands = 0 : i64, tpu.core_type = #tpu.core_type<tc>, window_params = [{transform_indices = @transform_0, window_bounds = array<i64: 1, 9, 9, 32>}, {pipeline_mode = #tpu.pipeline_mode<synchronous>, transform_indices = @transform_1, window_bounds = array<i64: 2, 2, 32, 32>}, {pipeline_mode = #tpu.pipeline_mode<synchronous>, transform_indices = @transform_2, window_bounds = array<i64: 1, 32>}, {transform_indices = @transform_3, window_bounds = array<i64: 1, 1, 8, 32>}]} {
    %c0 = arith.constant 0 : index
    %0 = arith.index_cast %arg1 : i32 to index
    %c0_0 = arith.constant 0 : index
    %c0_1 = arith.constant 0 : index
    %1 = vector.load %arg2[%c0, %0, %c0_0, %c0_1] : memref<1x9x9x32xbf16, #tpu.memory_space<vmem>>, vector<1x2x9x32xbf16>
    %2 = vector.shape_cast %1 : vector<1x2x9x32xbf16> to vector<2x9x32xbf16>
    %cst = arith.constant 0.000000e+00 : f32
    %3 = vector.broadcast %cst : f32 to vector<8x32xf32>
    %4 = vector.extract_strided_slice %2 {offsets = [0, 0, 0], sizes = [1, 9, 32], strides = [1, 1, 1]} : vector<2x9x32xbf16> to vector<1x9x32xbf16>
    %5 = vector.shape_cast %4 : vector<1x9x32xbf16> to vector<9x32xbf16>
    %6 = vector.extract_strided_slice %5 {offsets = [0, 0], sizes = [8, 32], strides = [1, 1]} : vector<9x32xbf16> to vector<8x32xbf16>
    %c0_2 = arith.constant 0 : index
    %c0_3 = arith.constant 0 : index
    %c0_4 = arith.constant 0 : index
    %c0_5 = arith.constant 0 : index
    %7 = vector.load %arg3[%c0_2, %c0_3, %c0_4, %c0_5] : memref<2x2x32x32xbf16, #tpu.memory_space<vmem>>, vector<1x1x32x32xbf16>
    %8 = vector.shape_cast %7 : vector<1x1x32x32xbf16> to vector<32x32xbf16>
    %cst_6 = arith.constant dense<0.000000e+00> : vector<8x32xf32>
    %9 = tpu.matmul %6, %8, %cst_6 {dimension_numbers = #tpu.dot_dimension_numbers<[1], [0], [0], [1], [0, 0, 1, 1], [], []>} : vector<8x32xbf16>, vector<32x32xbf16>, vector<8x32xf32> -> vector<8x32xf32>
    %10 = arith.addf %3, %9 : vector<8x32xf32>
    %11 = vector.extract_strided_slice %5 {offsets = [1, 0], sizes = [8, 32], strides = [1, 1]} : vector<9x32xbf16> to vector<8x32xbf16>
    %c0_7 = arith.constant 0 : index
    %c1 = arith.constant 1 : index
    %c0_8 = arith.constant 0 : index
    %c0_9 = arith.constant 0 : index
    %12 = vector.load %arg3[%c0_7, %c1, %c0_8, %c0_9] : memref<2x2x32x32xbf16, #tpu.memory_space<vmem>>, vector<1x1x32x32xbf16>
    %13 = vector.shape_cast %12 : vector<1x1x32x32xbf16> to vector<32x32xbf16>
    %cst_10 = arith.constant dense<0.000000e+00> : vector<8x32xf32>
    %14 = tpu.matmul %11, %13, %cst_10 {dimension_numbers = #tpu.dot_dimension_numbers<[1], [0], [0], [1], [0, 0, 1, 1], [], []>} : vector<8x32xbf16>, vector<32x32xbf16>, vector<8x32xf32> -> vector<8x32xf32>
    %15 = arith.addf %10, %14 : vector<8x32xf32>
    %16 = vector.extract_strided_slice %2 {offsets = [1, 0, 0], sizes = [1, 9, 32], strides = [1, 1, 1]} : vector<2x9x32xbf16> to vector<1x9x32xbf16>
    %17 = vector.shape_cast %16 : vector<1x9x32xbf16> to vector<9x32xbf16>
    %18 = vector.extract_strided_slice %17 {offsets = [0, 0], sizes = [8, 32], strides = [1, 1]} : vector<9x32xbf16> to vector<8x32xbf16>
    %c1_11 = arith.constant 1 : index
    %c0_12 = arith.constant 0 : index
    %c0_13 = arith.constant 0 : index
    %c0_14 = arith.constant 0 : index
    %19 = vector.load %arg3[%c1_11, %c0_12, %c0_13, %c0_14] : memref<2x2x32x32xbf16, #tpu.memory_space<vmem>>, vector<1x1x32x32xbf16>
    %20 = vector.shape_cast %19 : vector<1x1x32x32xbf16> to vector<32x32xbf16>
    %cst_15 = arith.constant dense<0.000000e+00> : vector<8x32xf32>
    %21 = tpu.matmul %18, %20, %cst_15 {dimension_numbers = #tpu.dot_dimension_numbers<[1], [0], [0], [1], [0, 0, 1, 1], [], []>} : vector<8x32xbf16>, vector<32x32xbf16>, vector<8x32xf32> -> vector<8x32xf32>
    %22 = arith.addf %15, %21 : vector<8x32xf32>
    %23 = vector.extract_strided_slice %17 {offsets = [1, 0], sizes = [8, 32], strides = [1, 1]} : vector<9x32xbf16> to vector<8x32xbf16>
    %c1_16 = arith.constant 1 : index
    %c1_17 = arith.constant 1 : index
    %c0_18 = arith.constant 0 : index
    %c0_19 = arith.constant 0 : index
    %24 = vector.load %arg3[%c1_16, %c1_17, %c0_18, %c0_19] : memref<2x2x32x32xbf16, #tpu.memory_space<vmem>>, vector<1x1x32x32xbf16>
    %25 = vector.shape_cast %24 : vector<1x1x32x32xbf16> to vector<32x32xbf16>
    %cst_20 = arith.constant dense<0.000000e+00> : vector<8x32xf32>
    %26 = tpu.matmul %23, %25, %cst_20 {dimension_numbers = #tpu.dot_dimension_numbers<[1], [0], [0], [1], [0, 0, 1, 1], [], []>} : vector<8x32xbf16>, vector<32x32xbf16>, vector<8x32xf32> -> vector<8x32xf32>
    %27 = arith.addf %22, %26 : vector<8x32xf32>
    %c0_21 = arith.constant 0 : index
    %c0_22 = arith.constant 0 : index
    %28 = vector.load %arg4[%c0_21, %c0_22] : memref<1x32xf32, #tpu.memory_space<vmem>>, vector<1x32xf32>
    %29 = vector.broadcast %28 : vector<1x32xf32> to vector<8x32xf32>
    %30 = arith.addf %27, %29 : vector<8x32xf32>
    %cst_23 = arith.constant 0.000000e+00 : f32
    %31 = vector.broadcast %cst_23 : f32 to vector<8x32xf32>
    %32 = arith.maximumf %30, %31 : vector<8x32xf32>
    %33 = arith.truncf %32 : vector<8x32xf32> to vector<8x32xbf16>
    %c0_24 = arith.constant 0 : index
    %c0_25 = arith.constant 0 : index
    %c0_26 = arith.constant 0 : index
    %c0_27 = arith.constant 0 : index
    %34 = vector.load %arg5[%c0_24, %c0_25, %c0_26, %c0_27] : memref<1x1x8x32xbf16, #tpu.memory_space<vmem>>, vector<1x1x8x32xbf16>
    %35 = vector.shape_cast %34 : vector<1x1x8x32xbf16> to vector<8x32xbf16>
    %36 = vector.shape_cast %33 : vector<8x32xbf16> to vector<1x1x8x32xbf16>
    tpu.vector_store %arg5[%c0_24, %c0_25, %c0_26, %c0_27], %36 {strides = array<i32>} : memref<1x1x8x32xbf16, #tpu.memory_space<vmem>>, vector<1x1x8x32xbf16>,
    return
  }
  func.func @transform_0(%arg0: i32, %arg1: i32) -> (i32, i32, i32, i32) {
    %c0_i32 = arith.constant 0 : i32
    %c0_i32_0 = arith.constant 0 : i32
    %c0_i32_1 = arith.constant 0 : i32
    %c0_i32_2 = arith.constant 0 : i32
    return %arg0, %c0_i32, %c0_i32_0, %c0_i32_1 : i32, i32, i32, i32
  }
  func.func @transform_1(%arg0: i32, %arg1: i32) -> (i32, i32, i32, i32) {
    %c0_i32 = arith.constant 0 : i32
    %c0_i32_0 = arith.constant 0 : i32
    %c0_i32_1 = arith.constant 0 : i32
    %c0_i32_2 = arith.constant 0 : i32
    %c0_i32_3 = arith.constant 0 : i32
    return %c0_i32, %c0_i32_0, %c0_i32_1, %c0_i32_2 : i32, i32, i32, i32
  }
  func.func @transform_2(%arg0: i32, %arg1: i32) -> (i32, i32) {
    %c0_i32 = arith.constant 0 : i32
    %c0_i32_0 = arith.constant 0 : i32
    %c0_i32_1 = arith.constant 0 : i32
    return %c0_i32, %c0_i32_0 : i32, i32
  }
  func.func @transform_3(%arg0: i32, %arg1: i32) -> (i32, i32, i32, i32) {
    %c0_i32 = arith.constant 0 : i32
    %c0_i32_0 = arith.constant 0 : i32
    %c0_i32_1 = arith.constant 0 : i32
    return %arg0, %arg1, %c0_i32, %c0_i32_0 : i32, i32, i32, i32
  }
}

module attributes {stable_mosaic.version = 11 : i64} {
  func.func @_bnconv_row_kernel(%arg0: i32, %arg1: i32, %arg2: memref<1x10x10x8xbf16, #tpu.memory_space<vmem>>, %arg3: memref<3x3x8x32xbf16, #tpu.memory_space<vmem>>, %arg4: memref<1x32xf32, #tpu.memory_space<vmem>>, %arg5: memref<1x1x8x32xbf16, #tpu.memory_space<vmem>>, %arg6: memref<1x1x8x32xf32, #tpu.memory_space<vmem>>) attributes {dimension_semantics = [#tpu.dimension_semantics<parallel>, #tpu.dimension_semantics<parallel>], iteration_bounds = array<i64: 2, 8>, scalar_prefetch = 0 : i64, scratch_operands = 0 : i64, tpu.core_type = #tpu.core_type<tc>, window_params = [{transform_indices = @transform_0, window_bounds = array<i64: 1, 10, 10, 8>}, {pipeline_mode = #tpu.pipeline_mode<synchronous>, transform_indices = @transform_1, window_bounds = array<i64: 3, 3, 8, 32>}, {pipeline_mode = #tpu.pipeline_mode<synchronous>, transform_indices = @transform_2, window_bounds = array<i64: 1, 32>}, {transform_indices = @transform_3, window_bounds = array<i64: 1, 1, 8, 32>}, {transform_indices = @transform_4, window_bounds = array<i64: 1, 1, 8, 32>}]} {
    %c0 = arith.constant 0 : index
    %0 = arith.index_cast %arg1 : i32 to index
    %c0_0 = arith.constant 0 : index
    %c0_1 = arith.constant 0 : index
    %1 = vector.load %arg2[%c0, %0, %c0_0, %c0_1] : memref<1x10x10x8xbf16, #tpu.memory_space<vmem>>, vector<1x3x10x8xbf16>
    %2 = vector.shape_cast %1 : vector<1x3x10x8xbf16> to vector<3x10x8xbf16>
    %cst = arith.constant 0.000000e+00 : f32
    %3 = vector.broadcast %cst : f32 to vector<8x32xf32>
    %4 = vector.extract_strided_slice %2 {offsets = [0, 0, 0], sizes = [1, 10, 8], strides = [1, 1, 1]} : vector<3x10x8xbf16> to vector<1x10x8xbf16>
    %5 = vector.shape_cast %4 : vector<1x10x8xbf16> to vector<10x8xbf16>
    %6 = vector.extract_strided_slice %5 {offsets = [0, 0], sizes = [8, 8], strides = [1, 1]} : vector<10x8xbf16> to vector<8x8xbf16>
    %c0_2 = arith.constant 0 : index
    %c0_3 = arith.constant 0 : index
    %c0_4 = arith.constant 0 : index
    %c0_5 = arith.constant 0 : index
    %7 = vector.load %arg3[%c0_2, %c0_3, %c0_4, %c0_5] : memref<3x3x8x32xbf16, #tpu.memory_space<vmem>>, vector<1x1x8x32xbf16>
    %8 = vector.shape_cast %7 : vector<1x1x8x32xbf16> to vector<8x32xbf16>
    %cst_6 = arith.constant dense<0.000000e+00> : vector<8x32xf32>
    %9 = tpu.matmul %6, %8, %cst_6 {dimension_numbers = #tpu.dot_dimension_numbers<[1], [0], [0], [1], [0, 0, 1, 1], [], []>} : vector<8x8xbf16>, vector<8x32xbf16>, vector<8x32xf32> -> vector<8x32xf32>
    %10 = arith.addf %3, %9 : vector<8x32xf32>
    %11 = vector.extract_strided_slice %5 {offsets = [1, 0], sizes = [8, 8], strides = [1, 1]} : vector<10x8xbf16> to vector<8x8xbf16>
    %c0_7 = arith.constant 0 : index
    %c1 = arith.constant 1 : index
    %c0_8 = arith.constant 0 : index
    %c0_9 = arith.constant 0 : index
    %12 = vector.load %arg3[%c0_7, %c1, %c0_8, %c0_9] : memref<3x3x8x32xbf16, #tpu.memory_space<vmem>>, vector<1x1x8x32xbf16>
    %13 = vector.shape_cast %12 : vector<1x1x8x32xbf16> to vector<8x32xbf16>
    %cst_10 = arith.constant dense<0.000000e+00> : vector<8x32xf32>
    %14 = tpu.matmul %11, %13, %cst_10 {dimension_numbers = #tpu.dot_dimension_numbers<[1], [0], [0], [1], [0, 0, 1, 1], [], []>} : vector<8x8xbf16>, vector<8x32xbf16>, vector<8x32xf32> -> vector<8x32xf32>
    %15 = arith.addf %10, %14 : vector<8x32xf32>
    %16 = vector.extract_strided_slice %5 {offsets = [2, 0], sizes = [8, 8], strides = [1, 1]} : vector<10x8xbf16> to vector<8x8xbf16>
    %c0_11 = arith.constant 0 : index
    %c2 = arith.constant 2 : index
    %c0_12 = arith.constant 0 : index
    %c0_13 = arith.constant 0 : index
    %17 = vector.load %arg3[%c0_11, %c2, %c0_12, %c0_13] : memref<3x3x8x32xbf16, #tpu.memory_space<vmem>>, vector<1x1x8x32xbf16>
    %18 = vector.shape_cast %17 : vector<1x1x8x32xbf16> to vector<8x32xbf16>
    %cst_14 = arith.constant dense<0.000000e+00> : vector<8x32xf32>
    %19 = tpu.matmul %16, %18, %cst_14 {dimension_numbers = #tpu.dot_dimension_numbers<[1], [0], [0], [1], [0, 0, 1, 1], [], []>} : vector<8x8xbf16>, vector<8x32xbf16>, vector<8x32xf32> -> vector<8x32xf32>
    %20 = arith.addf %15, %19 : vector<8x32xf32>
    %21 = vector.extract_strided_slice %2 {offsets = [1, 0, 0], sizes = [1, 10, 8], strides = [1, 1, 1]} : vector<3x10x8xbf16> to vector<1x10x8xbf16>
    %22 = vector.shape_cast %21 : vector<1x10x8xbf16> to vector<10x8xbf16>
    %23 = vector.extract_strided_slice %22 {offsets = [0, 0], sizes = [8, 8], strides = [1, 1]} : vector<10x8xbf16> to vector<8x8xbf16>
    %c1_15 = arith.constant 1 : index
    %c0_16 = arith.constant 0 : index
    %c0_17 = arith.constant 0 : index
    %c0_18 = arith.constant 0 : index
    %24 = vector.load %arg3[%c1_15, %c0_16, %c0_17, %c0_18] : memref<3x3x8x32xbf16, #tpu.memory_space<vmem>>, vector<1x1x8x32xbf16>
    %25 = vector.shape_cast %24 : vector<1x1x8x32xbf16> to vector<8x32xbf16>
    %cst_19 = arith.constant dense<0.000000e+00> : vector<8x32xf32>
    %26 = tpu.matmul %23, %25, %cst_19 {dimension_numbers = #tpu.dot_dimension_numbers<[1], [0], [0], [1], [0, 0, 1, 1], [], []>} : vector<8x8xbf16>, vector<8x32xbf16>, vector<8x32xf32> -> vector<8x32xf32>
    %27 = arith.addf %20, %26 : vector<8x32xf32>
    %28 = vector.extract_strided_slice %22 {offsets = [1, 0], sizes = [8, 8], strides = [1, 1]} : vector<10x8xbf16> to vector<8x8xbf16>
    %c1_20 = arith.constant 1 : index
    %c1_21 = arith.constant 1 : index
    %c0_22 = arith.constant 0 : index
    %c0_23 = arith.constant 0 : index
    %29 = vector.load %arg3[%c1_20, %c1_21, %c0_22, %c0_23] : memref<3x3x8x32xbf16, #tpu.memory_space<vmem>>, vector<1x1x8x32xbf16>
    %30 = vector.shape_cast %29 : vector<1x1x8x32xbf16> to vector<8x32xbf16>
    %cst_24 = arith.constant dense<0.000000e+00> : vector<8x32xf32>
    %31 = tpu.matmul %28, %30, %cst_24 {dimension_numbers = #tpu.dot_dimension_numbers<[1], [0], [0], [1], [0, 0, 1, 1], [], []>} : vector<8x8xbf16>, vector<8x32xbf16>, vector<8x32xf32> -> vector<8x32xf32>
    %32 = arith.addf %27, %31 : vector<8x32xf32>
    %33 = vector.extract_strided_slice %22 {offsets = [2, 0], sizes = [8, 8], strides = [1, 1]} : vector<10x8xbf16> to vector<8x8xbf16>
    %c1_25 = arith.constant 1 : index
    %c2_26 = arith.constant 2 : index
    %c0_27 = arith.constant 0 : index
    %c0_28 = arith.constant 0 : index
    %34 = vector.load %arg3[%c1_25, %c2_26, %c0_27, %c0_28] : memref<3x3x8x32xbf16, #tpu.memory_space<vmem>>, vector<1x1x8x32xbf16>
    %35 = vector.shape_cast %34 : vector<1x1x8x32xbf16> to vector<8x32xbf16>
    %cst_29 = arith.constant dense<0.000000e+00> : vector<8x32xf32>
    %36 = tpu.matmul %33, %35, %cst_29 {dimension_numbers = #tpu.dot_dimension_numbers<[1], [0], [0], [1], [0, 0, 1, 1], [], []>} : vector<8x8xbf16>, vector<8x32xbf16>, vector<8x32xf32> -> vector<8x32xf32>
    %37 = arith.addf %32, %36 : vector<8x32xf32>
    %38 = vector.extract_strided_slice %2 {offsets = [2, 0, 0], sizes = [1, 10, 8], strides = [1, 1, 1]} : vector<3x10x8xbf16> to vector<1x10x8xbf16>
    %39 = vector.shape_cast %38 : vector<1x10x8xbf16> to vector<10x8xbf16>
    %40 = vector.extract_strided_slice %39 {offsets = [0, 0], sizes = [8, 8], strides = [1, 1]} : vector<10x8xbf16> to vector<8x8xbf16>
    %c2_30 = arith.constant 2 : index
    %c0_31 = arith.constant 0 : index
    %c0_32 = arith.constant 0 : index
    %c0_33 = arith.constant 0 : index
    %41 = vector.load %arg3[%c2_30, %c0_31, %c0_32, %c0_33] : memref<3x3x8x32xbf16, #tpu.memory_space<vmem>>, vector<1x1x8x32xbf16>
    %42 = vector.shape_cast %41 : vector<1x1x8x32xbf16> to vector<8x32xbf16>
    %cst_34 = arith.constant dense<0.000000e+00> : vector<8x32xf32>
    %43 = tpu.matmul %40, %42, %cst_34 {dimension_numbers = #tpu.dot_dimension_numbers<[1], [0], [0], [1], [0, 0, 1, 1], [], []>} : vector<8x8xbf16>, vector<8x32xbf16>, vector<8x32xf32> -> vector<8x32xf32>
    %44 = arith.addf %37, %43 : vector<8x32xf32>
    %45 = vector.extract_strided_slice %39 {offsets = [1, 0], sizes = [8, 8], strides = [1, 1]} : vector<10x8xbf16> to vector<8x8xbf16>
    %c2_35 = arith.constant 2 : index
    %c1_36 = arith.constant 1 : index
    %c0_37 = arith.constant 0 : index
    %c0_38 = arith.constant 0 : index
    %46 = vector.load %arg3[%c2_35, %c1_36, %c0_37, %c0_38] : memref<3x3x8x32xbf16, #tpu.memory_space<vmem>>, vector<1x1x8x32xbf16>
    %47 = vector.shape_cast %46 : vector<1x1x8x32xbf16> to vector<8x32xbf16>
    %cst_39 = arith.constant dense<0.000000e+00> : vector<8x32xf32>
    %48 = tpu.matmul %45, %47, %cst_39 {dimension_numbers = #tpu.dot_dimension_numbers<[1], [0], [0], [1], [0, 0, 1, 1], [], []>} : vector<8x8xbf16>, vector<8x32xbf16>, vector<8x32xf32> -> vector<8x32xf32>
    %49 = arith.addf %44, %48 : vector<8x32xf32>
    %50 = vector.extract_strided_slice %39 {offsets = [2, 0], sizes = [8, 8], strides = [1, 1]} : vector<10x8xbf16> to vector<8x8xbf16>
    %c2_40 = arith.constant 2 : index
    %c2_41 = arith.constant 2 : index
    %c0_42 = arith.constant 0 : index
    %c0_43 = arith.constant 0 : index
    %51 = vector.load %arg3[%c2_40, %c2_41, %c0_42, %c0_43] : memref<3x3x8x32xbf16, #tpu.memory_space<vmem>>, vector<1x1x8x32xbf16>
    %52 = vector.shape_cast %51 : vector<1x1x8x32xbf16> to vector<8x32xbf16>
    %cst_44 = arith.constant dense<0.000000e+00> : vector<8x32xf32>
    %53 = tpu.matmul %50, %52, %cst_44 {dimension_numbers = #tpu.dot_dimension_numbers<[1], [0], [0], [1], [0, 0, 1, 1], [], []>} : vector<8x8xbf16>, vector<8x32xbf16>, vector<8x32xf32> -> vector<8x32xf32>
    %54 = arith.addf %49, %53 : vector<8x32xf32>
    %c0_45 = arith.constant 0 : index
    %c0_46 = arith.constant 0 : index
    %55 = vector.load %arg4[%c0_45, %c0_46] : memref<1x32xf32, #tpu.memory_space<vmem>>, vector<1x32xf32>
    %56 = vector.broadcast %55 : vector<1x32xf32> to vector<8x32xf32>
    %57 = arith.addf %54, %56 : vector<8x32xf32>
    %cst_47 = arith.constant 0.000000e+00 : f32
    %58 = vector.broadcast %cst_47 : f32 to vector<8x32xf32>
    %59 = arith.maximumf %57, %58 : vector<8x32xf32>
    %c0_48 = arith.constant 0 : index
    %c0_49 = arith.constant 0 : index
    %c0_50 = arith.constant 0 : index
    %c0_51 = arith.constant 0 : index
    %60 = vector.load %arg5[%c0_48, %c0_49, %c0_50, %c0_51] : memref<1x1x8x32xbf16, #tpu.memory_space<vmem>>, vector<1x1x8x32xbf16>
    %61 = vector.shape_cast %60 : vector<1x1x8x32xbf16> to vector<8x32xbf16>
    %62 = arith.extf %61 : vector<8x32xbf16> to vector<8x32xf32>
    %63 = arith.addf %59, %62 : vector<8x32xf32>
    %cst_52 = arith.constant 0.000000e+00 : f32
    %64 = vector.broadcast %cst_52 : f32 to vector<8x32xf32>
    %65 = arith.maximumf %63, %64 : vector<8x32xf32>
    %c0_53 = arith.constant 0 : index
    %c0_54 = arith.constant 0 : index
    %c0_55 = arith.constant 0 : index
    %c0_56 = arith.constant 0 : index
    %66 = vector.load %arg6[%c0_53, %c0_54, %c0_55, %c0_56] : memref<1x1x8x32xf32, #tpu.memory_space<vmem>>, vector<1x1x8x32xf32>
    %67 = vector.shape_cast %66 : vector<1x1x8x32xf32> to vector<8x32xf32>
    %68 = vector.shape_cast %65 : vector<8x32xf32> to vector<1x1x8x32xf32>
    tpu.vector_store %arg6[%c0_53, %c0_54, %c0_55, %c0_56], %68 {strides = array<i32>} : memref<1x1x8x32xf32, #tpu.memory_space<vmem>>, vector<1x1x8x32xf32>,
    return
  }
  func.func @transform_0(%arg0: i32, %arg1: i32) -> (i32, i32, i32, i32) {
    %c0_i32 = arith.constant 0 : i32
    %c0_i32_0 = arith.constant 0 : i32
    %c0_i32_1 = arith.constant 0 : i32
    %c0_i32_2 = arith.constant 0 : i32
    return %arg0, %c0_i32, %c0_i32_0, %c0_i32_1 : i32, i32, i32, i32
  }
  func.func @transform_1(%arg0: i32, %arg1: i32) -> (i32, i32, i32, i32) {
    %c0_i32 = arith.constant 0 : i32
    %c0_i32_0 = arith.constant 0 : i32
    %c0_i32_1 = arith.constant 0 : i32
    %c0_i32_2 = arith.constant 0 : i32
    %c0_i32_3 = arith.constant 0 : i32
    return %c0_i32, %c0_i32_0, %c0_i32_1, %c0_i32_2 : i32, i32, i32, i32
  }
  func.func @transform_2(%arg0: i32, %arg1: i32) -> (i32, i32) {
    %c0_i32 = arith.constant 0 : i32
    %c0_i32_0 = arith.constant 0 : i32
    %c0_i32_1 = arith.constant 0 : i32
    return %c0_i32, %c0_i32_0 : i32, i32
  }
  func.func @transform_3(%arg0: i32, %arg1: i32) -> (i32, i32, i32, i32) {
    %c0_i32 = arith.constant 0 : i32
    %c0_i32_0 = arith.constant 0 : i32
    %c0_i32_1 = arith.constant 0 : i32
    return %arg0, %arg1, %c0_i32, %c0_i32_0 : i32, i32, i32, i32
  }
  func.func @transform_4(%arg0: i32, %arg1: i32) -> (i32, i32, i32, i32) {
    %c0_i32 = arith.constant 0 : i32
    %c0_i32_0 = arith.constant 0 : i32
    %c0_i32_1 = arith.constant 0 : i32
    return %arg0, %arg1, %c0_i32, %c0_i32_0 : i32, i32, i32, i32
  }
}

</mosaic_0001>

<bundles_post_ra>
// kernel: residual_block_forward.4
= control target key start
LH: loop header
LB: loop body
LE: loop exit
PB: predicated region body
PF: predicated region fallthrough
CT: control target
= control target key end

     0   :  { %s758_s12 = smov 0   ;;  %s760_s13 = smov 0   ;;  %s857_s0 = inlined_call_operand.vmem [shape: bf16[2,9,9,32], index: 0, kind: input, shape index: {}]   ;;  %s858_s1 = inlined_call_operand.vmem [shape: bf16[2,2,32,8], index: 1, kind: input, shape index: {}]   ;;  %s859_s2 = inlined_call_operand.vmem [shape: f32[1,8], index: 2, kind: input, shape index: {}]   ;;  %s860_s3 = inlined_call_operand.vmem [shape: bf16[2,8,8,8], index: 3, kind: output, shape index: {}]  }
   0x1   :  { %s762_s14 = smov 0   ;;  %s764_s15 = smov 0  }
   0x2   :  { %s766_s16 = smov 0  }
   0x3 LB: > { %s22_s17 = sadd.s32 1, %s726_s14  ;;  %s25_s18 = sadd.s32 1, %s730_s15  ;;  %s734_s16 = sphi %s766_s16, %s13_s16   ;;  %s730_s15 = sphi %s764_s15, %s864_s15   ;;  %s726_s14 = sphi %s762_s14, %s863_s14   ;;  %s722_s13 = sphi %s760_s13, %s862_s13   ;;  %s718_s12 = sphi %s758_s12, %s861_s12  }
   0x4   : > { %p23_p0 = scmp.ge.s32.totalorder %s22_s17, 8  ;;  %p563_p1 = scmp.ge.s32.totalorder %s734_s16, 1 }
   0x5   : > { %p151_p2 = scmp.lt.s32.totalorder %s734_s16, 17 }
   0x6   : > { %s866_s17 = smov (%p23_p0, %s22_s17), 0  ;;  %s868_s18 = smov (!%p23_p0, %s25_s18), %s730_s15 }
   0x7   : > { %p152_p3 = pnand %p563_p1, %p151_p2  ;;  %p27_p4 = scmp.ge.s32.totalorder %s868_s18, 2 }
   0x8   : > { %v686_v0 = vld [vmem:[%s858_s1 + $0x10] sm:$0xff] (!%p152_p3)   ;;  %v736_v1 = vmov (!%p152_p3), 0.0   ;;  %v687_v2 = vld [vmem:[%s858_s1] sm:$0xff] (!%p152_p3)   ;;  %v688_v3 = vld [vmem:[%s858_s1 + $0x18] sm:$0xff] (!%p152_p3)   ;;  %vm737_vm0 = vmmov (!%p152_p3), 0   ;;  %p178_p5 = scmp.lt.s32.totalorder (!%p152_p3), %s722_s13, 1 }
   0x9   : > { %s870_s18 = smov (%p27_p4, %s868_s18), 0  ;;  %155 = sbr.rel (%p152_p3) target bundleno = 261 (0x105), region = 32 }
   0xa   : > { %611 = vmatprep.subr.bf16.mxu0 (!%p152_p3), %v736_v1  ;;  %619 = vmatprep.subr.bf16.mxu1 (!%p152_p3), %v736_v1  ;;  %v689_v4 = vld [vmem:[%s858_s1 + $0x8] sm:$0xff] (!%p152_p3)   ;;  %s598_s28 = sshll.u32 (!%p152_p3), %s718_s12, 3  ;;  %vm232_vm1 = vcmask (!%p152_p3), 261120   ;;  %v693_v5 = vld [vmem:[%s858_s1 + $0x30] sm:$0xff] (!%p152_p3)   ;;  %v695_v12 = vld [vmem:[%s858_s1 + $0x38] sm:$0xff] (!%p152_p3)   ;;  %p185_p6 = scmp.lt.s32.totalorder (!%p152_p3), %s718_s12, 7 }
   0xb   : > { %612 = vmatpush3.bf16.msra.mxu0 (!%p152_p3), %v686_v0  ;;  %623 = vmatprep.mubr.msk.bf16.mxu1 (!%p152_p3), %vm737_vm0, %v736_v1  ;;  %v692_v18 = vld [vmem:[%s858_s1 + $0x20] sm:$0xff] (!%p152_p3)   ;;  %v694_v22 = vld [vmem:[%s858_s1 + $0x28] sm:$0xff] (!%p152_p3)   ;;  %vm475_vm2 = vcmask (!%p152_p3), 60416  }
   0xc   : > { %620 = vmatpush3.bf16.msra.mxu1 (!%p152_p3), %v687_v2  ;;  %613 = vmatprep.subr.bf16.mxu0 (!%p152_p3), %v736_v1  ;;  %v595_v39 = vld [vmem:[%s859_s2] ss:$0 sm:$0xff] (!%p152_p3) }
   0xd   : > { %621 = vmatprep.subr.bf16.mxu1 (!%p152_p3), %v736_v1  ;;  %615 = vmatprep.mubr.msk.bf16.mxu0 (!%p152_p3), %vm737_vm0, %v736_v1 }
   0xf   : > { %614 = vmatpush3.bf16.msra.mxu0 (!%p152_p3), %v688_v3 }
  0x10   : > { %s872_s13 = smov (!%p178_p5, %s722_s13), 1  ;;  %622 = vmatpush3.bf16.msra.mxu1 %v689_v4  ;;  %627 = vmatprep.subr.bf16.mxu0 %v736_v1  ;;  %s874_s12 = smov (!%p185_p6, %s718_s12), 7 }
  0x11   : > { %s643_s27 = smul.u32 72, %s872_s13  ;;  %635 = vmatprep.subr.bf16.mxu1 %v736_v1  ;;  %s565_s21 = sshll.u32 %s872_s13, 3 }
  0x12   : > { %s188_s22 = sadd.s32 %s565_s21, %s874_s12 }
  0x13   : > { %s182_s4 = scalar_lea.vmem %s857_s0, %s643_s27  ;;  %s566_s25 = sshll.u32 %s188_s22, 2 }
  0x14   : > { %s194_s7 = scalar_lea.vmem %s182_s4, %s598_s28  ;;  %s190_s28 = scalar_lea.vmem %s860_s3, %s566_s25 }
  0x15   : > { %v195_v6 = vld [vmem:[%s194_s7] sm:$0xf]  ;;  %v196_v7 = vld [vmem:[%s194_s7 + $0x4] sm:$0x1]  ;;  %v197_v8 = vld [vmem:[%s194_s7 + $0x8] sm:$0xf] }
  0x16   : > { %v198_v9 = vld [vmem:[%s194_s7 + $0xc] sm:$0x1]  ;;  %v573_v10 = vcombine.low %v195_v6, %v196_v7  ;;  %624 = vmatmul.mubr.msk.bf16.vlgmr.msra.gmra.mrb[0].mxu1 %vm232_vm1, %v195_v6 }
  0x17   : > { %v591_v11 = vcombine.low %v197_v8, %v198_v9  ;;  %636 = vmatpush3.bf16.msra.mxu1 %v693_v5  ;;  %639 = vmatprep.mubr.msk.bf16.mxu1 %vm737_vm0, %v736_v1 }
  0x18   : > { %v214_v13 = vshrl.u32 %v573_v10, 16  ;;  %v216_v14 = vshll.u32 %v573_v10, 16  ;;  %637 = vmatprep.subr.bf16.mxu1 %v736_v1 }
  0x19   : > { %v403_v15 = vshrl.u32 %v591_v11, 16  ;;  %v405_v16 = vshll.u32 %v591_v11, 16 }
  0x1a   : > { %v218_v17 = vrot.slane %v216_v14, 1 }
  0x1b   : > { %638 = vmatpush3.bf16.msra.mxu1 %v695_v12  ;;  %v407_v19 = vrot.slane %v405_v16, 1 }
  0x1c   : > { %v219_v20 = vor.u32 %v218_v17, %v214_v13 }
  0x1d   : > { %v408_v21 = vor.u32 %v407_v19, %v403_v15 }
  0x1e   : > { %616 = vmatmul.mubr.msk.bf16.vlgmr.msra.gmra.mrb[0].mxu0 %vm232_vm1, %v219_v20 }
  0x1f   : > { %628 = vmatpush3.bf16.msra.mxu0 %v692_v18  ;;  %631 = vmatprep.mubr.msk.bf16.mxu0 %vm737_vm0, %v736_v1 }
  0x20   : > { %629 = vmatprep.subr.bf16.mxu0 %v736_v1  ;;  %640 = vmatmul.mubr.msk.bf16.vlgmr.msra.gmra.mrb[4].mxu1 %vm232_vm1, %v408_v21 }
  0x23   : > { %630 = vmatpush3.bf16.msra.mxu0 %v694_v22 }
  0x26   : > { %632 = vmatmul.mubr.msk.bf16.vlgmr.msra.gmra.mrb[4].mxu0 %vm232_vm1, %v197_v8 }
  0xe9   : > { %v325_v23 = vpop.f32.mrb[0].mxu1 }
  0xea   : > { %v625_v24 = vpop.f32.mrb[1].mxu1 }
  0xeb   : > { %v328_v25 = vpop.f32.mrb[2].mxu1 }
  0xec   : > { %v626_v26 = vpop.f32.mrb[3].mxu1 }
  0xf1   : > { %v270_v27 = vpop.f32.mrb[0].mxu0 }
  0xf2   : > { %v326_v28 = vadd.f32 %v325_v23, %v270_v27  ;;  %v617_v29 = vpop.f32.mrb[1].mxu0 }
  0xf3   : > { %v273_v30 = vpop.f32.mrb[2].mxu0  ;;  %v458_v31 = vpop.f32.mrb[4].mxu1 }
  0xf4   : > { %v618_v32 = vpop.f32.mrb[3].mxu0  ;;  %v641_v33 = vpop.f32.mrb[5].mxu1 }
  0xf5   : > { %v461_v34 = vpop.f32.mrb[6].mxu1 }
  0xf6   : > { %v642_v35 = vpop.f32.mrb[7].mxu1 }
  0xf9   : > { %v385_v36 = vpop.f32.mrb[4].mxu0 }
  0xfa   : > { %v391_v37 = vadd.f32 %v385_v36, %v326_v28  ;;  %v633_v38 = vpop.f32.mrb[5].mxu0 }
  0xfb   : > { %v388_v40 = vpop.f32.mrb[6].mxu0 }
  0xfc   : > { %v464_v41 = vadd.f32 %v458_v31, %v391_v37  ;;  %v634_v42 = vpop.f32.mrb[7].mxu0 }
  0xfe   : > { %v472_v43 = vadd.f32 %v595_v39, %v464_v41 }
 0x100   : > { %v473_v44 = vmax.f32 %v472_v43, 0.0 }
 0x102   : > { %v474_v45 = vpack.c.bf16 %v473_v44, %v473_v44 }
 0x104   : > { %476 = vst.msk [vmem:[%s190_s28] sm:$0xf] %vm475_vm2, %v474_v45 }
 0x105 PF: > { %s13_s16 = sadd.s32 1, %s734_s16   ;;  %s861_s12 = smov %s726_s14 }
 0x106   : > { %p10_p7 = scmp.ge.s32.totalorder %s13_s16, 18   ;;  %s862_s13 = smov %s730_s15 }
 0x107   : > { %s863_s14 = smov %s866_s17  ;;  %s864_s15 = smov %s870_s18 }
 0x108   :  { %12 = sbr.rel (!%p10_p7) target bundleno = 3 (0x3), region = 66 }

// kernel: residual_block_forward.3
= control target key start
LH: loop header
LB: loop body
LE: loop exit
PB: predicated region body
PF: predicated region fallthrough
CT: control target
= control target key end

     0   :  { %s758_s12 = smov 0   ;;  %s760_s13 = smov 0   ;;  %s857_s0 = inlined_call_operand.vmem [shape: bf16[2,9,9,32], index: 0, kind: input, shape index: {}]   ;;  %s858_s1 = inlined_call_operand.vmem [shape: bf16[2,2,32,32], index: 1, kind: input, shape index: {}]   ;;  %s859_s2 = inlined_call_operand.vmem [shape: f32[1,32], index: 2, kind: input, shape index: {}]   ;;  %s860_s3 = inlined_call_operand.vmem [shape: bf16[2,8,8,32], index: 3, kind: output, shape index: {}]  }
   0x1   :  { %s762_s14 = smov 0   ;;  %s764_s15 = smov 0  }
   0x2   :  { %s766_s16 = smov 0  }
   0x3 LB: > { %s22_s17 = sadd.s32 1, %s726_s14  ;;  %s25_s18 = sadd.s32 1, %s730_s15  ;;  %s734_s16 = sphi %s766_s16, %s13_s16   ;;  %s730_s15 = sphi %s764_s15, %s864_s15   ;;  %s726_s14 = sphi %s762_s14, %s863_s14   ;;  %s722_s13 = sphi %s760_s13, %s862_s13   ;;  %s718_s12 = sphi %s758_s12, %s861_s12  }
   0x4   : > { %p23_p0 = scmp.ge.s32.totalorder %s22_s17, 8  ;;  %p563_p1 = scmp.ge.s32.totalorder %s734_s16, 1 }
   0x5   : > { %p151_p2 = scmp.lt.s32.totalorder %s734_s16, 17 }
   0x6   : > { %s866_s17 = smov (%p23_p0, %s22_s17), 0  ;;  %s868_s18 = smov (!%p23_p0, %s25_s18), %s730_s15 }
   0x7   : > { %p152_p3 = pnand %p563_p1, %p151_p2  ;;  %p27_p4 = scmp.ge.s32.totalorder %s868_s18, 2 }
   0x8   : > { %v686_v0 = vld [vmem:[%s858_s1 + $0x10] sm:$0xff] (!%p152_p3)   ;;  %v736_v1 = vmov (!%p152_p3), 0.0   ;;  %v687_v2 = vld [vmem:[%s858_s1] sm:$0xff] (!%p152_p3)   ;;  %v688_v3 = vld [vmem:[%s858_s1 + $0x18] sm:$0xff] (!%p152_p3)   ;;  %vm737_vm0 = vmmov (!%p152_p3), 0   ;;  %p178_p5 = scmp.lt.s32.totalorder (!%p152_p3), %s722_s13, 1 }
   0x9   : > { %s870_s18 = smov (%p27_p4, %s868_s18), 0  ;;  %155 = sbr.rel (%p152_p3) target bundleno = 261 (0x105), region = 32 }
   0xa   : > { %611 = vmatprep.subr.bf16.mxu0 (!%p152_p3), %v736_v1  ;;  %619 = vmatprep.subr.bf16.mxu1 (!%p152_p3), %v736_v1  ;;  %v689_v4 = vld [vmem:[%s858_s1 + $0x8] sm:$0xff] (!%p152_p3)   ;;  %s598_s28 = sshll.u32 (!%p152_p3), %s718_s12, 3  ;;  %vm232_vm1 = vcmask (!%p152_p3), 261120   ;;  %v693_v5 = vld [vmem:[%s858_s1 + $0x30] sm:$0xff] (!%p152_p3)   ;;  %v695_v12 = vld [vmem:[%s858_s1 + $0x38] sm:$0xff] (!%p152_p3)   ;;  %p185_p6 = scmp.lt.s32.totalorder (!%p152_p3), %s718_s12, 7 }
   0xb   : > { %612 = vmatpush3.bf16.msra.mxu0 (!%p152_p3), %v686_v0  ;;  %623 = vmatprep.mubr.msk.bf16.mxu1 (!%p152_p3), %vm737_vm0, %v736_v1  ;;  %v692_v18 = vld [vmem:[%s858_s1 + $0x20] sm:$0xff] (!%p152_p3)   ;;  %v694_v22 = vld [vmem:[%s858_s1 + $0x28] sm:$0xff] (!%p152_p3)   ;;  %vm475_vm2 = vcmask (!%p152_p3), 257024  }
   0xc   : > { %620 = vmatpush3.bf16.msra.mxu1 (!%p152_p3), %v687_v2  ;;  %613 = vmatprep.subr.bf16.mxu0 (!%p152_p3), %v736_v1  ;;  %v595_v39 = vld [vmem:[%s859_s2] ss:$0 sm:$0xff] (!%p152_p3) }
   0xd   : > { %621 = vmatprep.subr.bf16.mxu1 (!%p152_p3), %v736_v1  ;;  %615 = vmatprep.mubr.msk.bf16.mxu0 (!%p152_p3), %vm737_vm0, %v736_v1 }
   0xf   : > { %614 = vmatpush3.bf16.msra.mxu0 (!%p152_p3), %v688_v3 }
  0x10   : > { %s872_s13 = smov (!%p178_p5, %s722_s13), 1  ;;  %622 = vmatpush3.bf16.msra.mxu1 %v689_v4  ;;  %627 = vmatprep.subr.bf16.mxu0 %v736_v1  ;;  %s874_s12 = smov (!%p185_p6, %s718_s12), 7 }
  0x11   : > { %s643_s27 = smul.u32 72, %s872_s13  ;;  %635 = vmatprep.subr.bf16.mxu1 %v736_v1  ;;  %s565_s21 = sshll.u32 %s872_s13, 3 }
  0x12   : > { %s188_s22 = sadd.s32 %s565_s21, %s874_s12 }
  0x13   : > { %s182_s4 = scalar_lea.vmem %s857_s0, %s643_s27  ;;  %s566_s25 = sshll.u32 %s188_s22, 2 }
  0x14   : > { %s194_s7 = scalar_lea.vmem %s182_s4, %s598_s28  ;;  %s190_s28 = scalar_lea.vmem %s860_s3, %s566_s25 }
  0x15   : > { %v195_v6 = vld [vmem:[%s194_s7] sm:$0xf]  ;;  %v196_v7 = vld [vmem:[%s194_s7 + $0x4] sm:$0x1]  ;;  %v197_v8 = vld [vmem:[%s194_s7 + $0x8] sm:$0xf] }
  0x16   : > { %v198_v9 = vld [vmem:[%s194_s7 + $0xc] sm:$0x1]  ;;  %v573_v10 = vcombine.low %v195_v6, %v196_v7  ;;  %624 = vmatmul.mubr.msk.bf16.vlgmr.msra.gmra.mrb[0].mxu1 %vm232_vm1, %v195_v6 }
  0x17   : > { %v591_v11 = vcombine.low %v197_v8, %v198_v9  ;;  %636 = vmatpush3.bf16.msra.mxu1 %v693_v5  ;;  %639 = vmatprep.mubr.msk.bf16.mxu1 %vm737_vm0, %v736_v1 }
  0x18   : > { %v214_v13 = vshrl.u32 %v573_v10, 16  ;;  %v216_v14 = vshll.u32 %v573_v10, 16  ;;  %637 = vmatprep.subr.bf16.mxu1 %v736_v1 }
  0x19   : > { %v403_v15 = vshrl.u32 %v591_v11, 16  ;;  %v405_v16 = vshll.u32 %v591_v11, 16 }
  0x1a   : > { %v218_v17 = vrot.slane %v216_v14, 1 }
  0x1b   : > { %638 = vmatpush3.bf16.msra.mxu1 %v695_v12  ;;  %v407_v19 = vrot.slane %v405_v16, 1 }
  0x1c   : > { %v219_v20 = vor.u32 %v218_v17, %v214_v13 }
  0x1d   : > { %v408_v21 = vor.u32 %v407_v19, %v403_v15 }
  0x1e   : > { %616 = vmatmul.mubr.msk.bf16.vlgmr.msra.gmra.mrb[0].mxu0 %vm232_vm1, %v219_v20 }
  0x1f   : > { %628 = vmatpush3.bf16.msra.mxu0 %v692_v18  ;;  %631 = vmatprep.mubr.msk.bf16.mxu0 %vm737_vm0, %v736_v1 }
  0x20   : > { %629 = vmatprep.subr.bf16.mxu0 %v736_v1  ;;  %640 = vmatmul.mubr.msk.bf16.vlgmr.msra.gmra.mrb[4].mxu1 %vm232_vm1, %v408_v21 }
  0x23   : > { %630 = vmatpush3.bf16.msra.mxu0 %v694_v22 }
  0x26   : > { %632 = vmatmul.mubr.msk.bf16.vlgmr.msra.gmra.mrb[4].mxu0 %vm232_vm1, %v197_v8 }
  0xe9   : > { %v325_v23 = vpop.f32.mrb[0].mxu1 }
  0xea   : > { %v625_v24 = vpop.f32.mrb[1].mxu1 }
  0xeb   : > { %v328_v25 = vpop.f32.mrb[2].mxu1 }
  0xec   : > { %v626_v26 = vpop.f32.mrb[3].mxu1 }
  0xf1   : > { %v270_v27 = vpop.f32.mrb[0].mxu0 }
  0xf2   : > { %v326_v28 = vadd.f32 %v325_v23, %v270_v27  ;;  %v617_v29 = vpop.f32.mrb[1].mxu0 }
  0xf3   : > { %v273_v30 = vpop.f32.mrb[2].mxu0  ;;  %v458_v31 = vpop.f32.mrb[4].mxu1 }
  0xf4   : > { %v618_v32 = vpop.f32.mrb[3].mxu0  ;;  %v641_v33 = vpop.f32.mrb[5].mxu1 }
  0xf5   : > { %v461_v34 = vpop.f32.mrb[6].mxu1 }
  0xf6   : > { %v642_v35 = vpop.f32.mrb[7].mxu1 }
  0xf9   : > { %v385_v36 = vpop.f32.mrb[4].mxu0 }
  0xfa   : > { %v391_v37 = vadd.f32 %v385_v36, %v326_v28  ;;  %v633_v38 = vpop.f32.mrb[5].mxu0 }
  0xfb   : > { %v388_v40 = vpop.f32.mrb[6].mxu0 }
  0xfc   : > { %v464_v41 = vadd.f32 %v458_v31, %v391_v37  ;;  %v634_v42 = vpop.f32.mrb[7].mxu0 }
  0xfe   : > { %v472_v43 = vadd.f32 %v595_v39, %v464_v41 }
 0x100   : > { %v473_v44 = vmax.f32 %v472_v43, 0.0 }
 0x102   : > { %v474_v45 = vpack.c.bf16 %v473_v44, %v473_v44 }
 0x104   : > { %476 = vst.msk [vmem:[%s190_s28] sm:$0xf] %vm475_vm2, %v474_v45 }
 0x105 PF: > { %s13_s16 = sadd.s32 1, %s734_s16   ;;  %s861_s12 = smov %s726_s14 }
 0x106   : > { %p10_p7 = scmp.ge.s32.totalorder %s13_s16, 18   ;;  %s862_s13 = smov %s730_s15 }
 0x107   : > { %s863_s14 = smov %s866_s17  ;;  %s864_s15 = smov %s870_s18 }
 0x108   :  { %12 = sbr.rel (!%p10_p7) target bundleno = 3 (0x3), region = 66 }

// kernel: residual_block_forward.5
= control target key start
LH: loop header
LB: loop body
LE: loop exit
PB: predicated region body
PF: predicated region fallthrough
CT: control target
= control target key end

     0   :  { %9 = vsyncpa [#allocation3], 0  ;;  %s1384_s0 = inlined_call_operand.vmem [shape: bf16[2,10,10,8], index: 0, kind: input, shape index: {}]   ;;  %s1385_s1 = inlined_call_operand.vmem [shape: bf16[3,3,8,32], index: 1, kind: input, shape index: {}]   ;;  %s1386_s2 = inlined_call_operand.vmem [shape: f32[1,32], index: 2, kind: input, shape index: {}]   ;;  %s1387_s3 = inlined_call_operand.vmem [shape: bf16[2,8,8,32], index: 3, kind: input, shape index: {}]   ;;  %s1388_s4 = inlined_call_operand.hbm [shape: f32[2,8,8,32], index: 4, kind: output, shape index: {}]  }
   0x1   :  { %11 = vsyncpa [#allocation3 + $0x1], 0  ;;  %s1164_s15 = smov 0   ;;  %s1166_s16 = smov 0  }
   0x2   :  { %s1168_s17 = smov 0   ;;  %s1170_s18 = smov 0  }
   0x3   :  { %s1172_s19 = smov 0   ;;  %s1174_s20 = smov 0  }
   0x4   :  { %s1176_s21 = smov 0   ;;  %s1178_s22 = smov 0  }
   0x5 LB: > { %s853_s23 = sadd.s32 4294967295, %s1134_s22   ;;  %s854_s24 = sadd.s32 4294967294, %s1134_s22   ;;  %s1134_s22 = sphi %s1178_s22, %s17_s22   ;;  %s1130_s21 = sphi %s1176_s21, %s1397_s21   ;;  %s1126_s20 = sphi %s1174_s20, %s1396_s20   ;;  %s1122_s19 = sphi %s1172_s19, %s1395_s19   ;;  %s1118_s18 = sphi %s1170_s18, %s1394_s18   ;;  %s1114_s17 = sphi %s1168_s17, %s1393_s17   ;;  %s1110_s16 = sphi %s1166_s16, %s1392_s16   ;;  %s1106_s15 = sphi %s1164_s15, %s1391_s15  }
   0x6   : > { %s26_s25 = sadd.s32 1, %s1126_s20  ;;  %s29_s26 = sadd.s32 1, %s1130_s21 }
   0x7   : > { %p27_p0 = scmp.ge.s32.totalorder %s26_s25, 8  ;;  %p144_p1 = scmp.ne.s32.totalorder %s1114_s17, %s1110_s16 }
   0x8   : > { %p145_p2 = scmp.eq.s32.totalorder %s853_s23, 15  ;;  %p150_p5 = scmp.ne.s32.totalorder %s1110_s16, %s1106_s15 }
   0x9   : > { %s1399_s25 = smov (%p27_p0, %s26_s25), 0  ;;  %s1401_s26 = smov (!%p27_p0, %s29_s26), %s1130_s21 }
   0xa   : > { %s130_s27 = ssub.s32 %s1126_s20, %s1399_s25  ;;  %p1215_p3 = por %p145_p2, %p144_p1 }
   0xb   : > { %p31_p4 = scmp.ge.s32.totalorder %s1401_s26, 2  ;;  %p151_p6 = scmp.eq.s32.totalorder %s854_s24, 15 }
   0xc   : > { %p857_p7 = scmp.ge.s32.totalorder %s1134_s22, 1  ;;  %p194_p9 = scmp.lt.s32.totalorder %s1134_s22, 17 }
   0xd   : > { %s1403_s26 = smov (%p31_p4, %s1401_s26), 0  ;;  %p1224_p8 = por %p151_p6, %p150_p5 }
   0xe   : > { %s129_s30 = ssub.s32 %s1130_s21, %s1403_s26  ;;  %s134_s5 = sadd.s32 1, %s1114_s17 }
   0xf   : > { %s131_s6 = sor.u32 %s130_s27, %s129_s30  ;;  %p195_p10 = pnand %p857_p7, %p194_p9 }
  0x10   : > { %p132_p11 = scmp.eq.s32.totalorder %s131_s6, 0  ;;  %v864_v0 = vld [vmem:[%s1385_s1 + $0x4] sm:$0xf] (!%p195_p10)  ;;  %vm270_vm0 = vcmask (!%p195_p10), 1043456   ;;  %v251_v1 = vld [vmem:[%s1385_s1] sm:$0xf] (!%p195_p10) }
  0x11   : > { %198 = sbr.rel (%p195_p10) target bundleno = 307 (0x133), region = 36  ;;  %v1136_v2 = vmov (!%p195_p10), 0.0   ;;  %v272_v3 = vsel (!%p195_p10), %vm270_vm0, %v864_v0, 0  ;;  %v318_v4 = vsel (!%p195_p10), %vm270_vm0, %v251_v1, 0  ;;  %p228_p12 = scmp.lt.s32.totalorder (!%p195_p10), %s1122_s19, 1  ;;  %vm1137_vm1 = vmmov (!%p195_p10), 0  }
  0x12   : > { %s1233_s7 = scalar_select %p132_p11, %s1114_s17, %s134_s5  }
  0x13   : > { %909 = vmatprep.subr.bf16.mxu0 (!%p195_p10), %v1136_v2  ;;  %915 = vmatprep.subr.bf16.mxu1 (!%p195_p10), %v1136_v2  ;;  %s890_s14 = sshll.u32 (!%p195_p10), %s1118_s18, 3  ;;  %v870_v5 = vld [vmem:[%s1385_s1 + $0xc] sm:$0xf] (!%p195_p10)  ;;  %vm266_vm2 = vcmask (!%p195_p10), 64512   ;;  %v868_v12 = vld [vmem:[%s1385_s1 + $0x8] sm:$0xf] (!%p195_p10) }
  0x14   : > { %910 = vmatpush3.bf16.msra.mxu0 (!%p195_p10), %v272_v3  ;;  %916 = vmatpush3.bf16.msra.mxu1 (!%p195_p10), %v318_v4  ;;  %v416_v6 = vsel (!%p195_p10), %vm270_vm0, %v870_v5, 0  ;;  %v875_v15 = vld [vmem:[%s1385_s1 + $0x14] sm:$0xf] (!%p195_p10)  ;;  %v367_v20 = vsel (!%p195_p10), %vm270_vm0, %v868_v12, 0  ;;  %v872_v24 = vld [vmem:[%s1385_s1 + $0x10] sm:$0xf] (!%p195_p10) }
  0x15   : > { %911 = vmatprep.mubr.msk.bf16.mxu0 (!%p195_p10), %vm1137_vm1, %v1136_v2  ;;  %917 = vmatprep.mubr.msk.bf16.mxu1 (!%p195_p10), %vm1137_vm1, %v1136_v2  ;;  %v527_v21 = vsel (!%p195_p10), %vm270_vm0, %v875_v15, 0  ;;  %v879_v28 = vld [vmem:[%s1385_s1 + $0x1c] sm:$0xf] (!%p195_p10)  ;;  %v477_v30 = vsel (!%p195_p10), %vm270_vm0, %v872_v24, 0  ;;  %v877_v36 = vld [vmem:[%s1385_s1 + $0x18] sm:$0xf] (!%p195_p10) }
  0x16   : > { %921 = vmatprep.subr.bf16.mxu0 (!%p195_p10), %v1136_v2  ;;  %927 = vmatprep.subr.bf16.mxu1 (!%p195_p10), %v1136_v2  ;;  %v637_v31 = vsel (!%p195_p10), %vm270_vm0, %v879_v28, 0  ;;  %v576_v39 = vsel (!%p195_p10), %vm270_vm0, %v877_v36, 0  ;;  %v882_v40 = vld [vmem:[%s1385_s1 + $0x20] sm:$0xf] (!%p195_p10)  ;;  %p235_p13 = scmp.lt.s32.totalorder (!%p195_p10), %s1118_s18, 7  ;;  %s225_s24 = sand.u32 (!%p195_p10), 1, %s1110_s16  }
  0x17   : > { %v687_v41 = vsel (!%p195_p10), %vm270_vm0, %v882_v40, 0  ;;  %vm743_vm3 = vcmask (!%p195_p10), 261120  }
  0x18   : > { %s1251_s12 = scalar_select %p228_p12, %s1122_s19, 1 }
  0x19   : > { %s236_s8 = scalar_select %p235_p13, %s1118_s18, 7 }
  0x1a   : > { %s963_s13 = smul.u32 80, %s1251_s12  ;;  %s860_s9 = sshll.u32 %s1251_s12, 3 }
  0x1b   : > { %s238_s10 = sadd.s32 %s860_s9, %s236_s8  ;;  %s858_s12 = sshll.u32 %s225_s24, 3 }
  0x1c   : > { %s232_s5 = scalar_lea.vmem %s1384_s0, %s963_s13  ;;  %s861_s11 = sshll.u32 %s238_s10, 2 }
  0x1d   : > { %s244_s6 = scalar_lea.vmem %s232_s5, %s890_s14  ;;  %s240_s23 = scalar_lea.vmem %s1387_s3, %s861_s11 }
  0x1e   : > { %v245_v7 = vld [vmem:[%s244_s6] sm:$0xf]  ;;  %v246_v8 = vld [vmem:[%s244_s6 + $0x4] sm:$0x1]  ;;  %v247_v14 = vld [vmem:[%s244_s6 + $0x8] sm:$0xf] }
  0x1f   : > { %v865_v9 = vcombine.low %v245_v7, %v246_v8  ;;  %918 = vmatmul.mubr.msk.bf16.vlgmr.msra.gmra.mrb[0].mxu1 %vm266_vm2, %v245_v7  ;;  %v248_v16 = vld [vmem:[%s244_s6 + $0xc] sm:$0x1]  ;;  %v249_v17 = vld [vmem:[%s244_s6 + $0x10] sm:$0xf]  ;;  %v250_v18 = vld [vmem:[%s244_s6 + $0x14] sm:$0x1] }
  0x20   : > { %928 = vmatpush3.bf16.msra.mxu1 %v416_v6  ;;  %929 = vmatprep.mubr.msk.bf16.mxu1 %vm1137_vm1, %v1136_v2  ;;  %v873_v22 = vcombine.low %v247_v14, %v248_v16  ;;  %v880_v23 = vcombine.low %v249_v17, %v250_v18  ;;  %v884_v18 = vld [vmem:[%s1386_s2] ss:$0 sm:$0xff]  ;;  %s886_s5 = sshll.u32 %s1122_s19, 3  ;;  %s227_s9 = scalar_lea.vmem [#allocation2], %s858_s12 }
  0x21   : > { %v260_v10 = vshrl.u32 %v865_v9, 16  ;;  %v262_v11 = vshll.u32 %v865_v9, 16  ;;  %939 = vmatprep.subr.bf16.mxu1 %v1136_v2  ;;  %v362_v25 = vrot.slane %v865_v9, 1  ;;  %s757_s6 = sadd.s32 %s1118_s18, %s886_s5  ;;  %s761_s10 = sshll.u32 %s227_s9, 4  ;;  %s1333_s10 = int_to_ptr.vmem [resolvable:$true] %s761_s10 }
  0x22   : > { %v469_v26 = vshll.u32 %v873_v22, 16  ;;  %v522_v27 = vrot.slane %v873_v22, 1  ;;  %v629_v29 = vshll.u32 %v880_v23, 16  ;;  %v467_v32 = vshrl.u32 %v873_v22, 16  ;;  %s887_s8 = sshll.u32 %s757_s6, 7  ;;  %s746_s19 = scalar_lea.sflag [#allocation3], %s225_s24 }
  0x23   : > { %v264_v13 = vrot.slane %v262_v11, 1  ;;  %v627_v34 = vshrl.u32 %v880_v23, 16  ;;  %v682_v42 = vrot.slane %v880_v23, 1  ;;  %s1331_s14 = scalar_lea.hbm %s1388_s4, %s887_s8  ;;  %s1040_s18 = scalar_lea.vmem %s1333_s10, 128 }
  0x24   : > { %v471_v33 = vrot.slane %v469_v26, 1  ;;  %v631_v35 = vrot.slane %v629_v29, 1  ;;  %p1041_p0 = scmp.ne.s32.totalorder %s1333_s10, %s1040_s18 }
  0x25   : > { %v265_v19 = vor.u32 %v264_v13, %v260_v10 }
  0x26   : > { %v472_v37 = vor.u32 %v471_v33, %v467_v32  ;;  %v632_v38 = vor.u32 %v631_v35, %v627_v34  ;;  %p1042_p1 = pnand %p1041_p0, %p1215_p3 }
  0x27   : > { %912 = vmatmul.mubr.msk.bf16.vlgmr.msra.gmra.mrb[0].mxu0 %vm266_vm2, %v265_v19  ;;  %930 = vmatmul.mubr.msk.bf16.vlgmr.msra.gmra.mrb[4].mxu1 %vm266_vm2, %v247_v14 }
  0x28   : > { %922 = vmatpush3.bf16.msra.mxu0 %v367_v20  ;;  %923 = vmatprep.mubr.msk.bf16.mxu0 %vm1137_vm1, %v1136_v2  ;;  %v739_v20 = vld [vmem:[%s240_s23] sm:$0xf]  ;;  %p1043_p2 = pneg %p1042_p1  ;;  %s1138_s23 = smov [#allocation2]  }
  0x29   : > { %933 = vmatprep.subr.bf16.mxu0 %v1136_v2  ;;  %940 = vmatpush3.bf16.msra.mxu1 %v527_v21  ;;  %s1044_s27 = sshll.u32 %s1138_s23, 4  ;;  %s1045_s27 = int_to_ptr.vmem [resolvable:$false] %s1044_s27 }
  0x2a   : > { %941 = vmatprep.mubr.msk.bf16.mxu1 %vm1137_vm1, %v1136_v2  ;;  %951 = vmatprep.subr.bf16.mxu1 %v1136_v2  ;;  %s1046_s30 = scalar_lea.vmem %s1045_s27, 256  ;;  %p1047_p4 = scmp.lt.s32.totalorder %s1333_s10, %s1045_s27 }
  0x2b   : > { %p1048_p5 = scmp.lt.s32.totalorder %s1046_s30, %s1040_s18 }
  0x2d   : > { %p1049_p6 = por %p1048_p5, %p1047_p4 }
  0x2f   : > { %924 = vmatmul.mubr.msk.bf16.vlgmr.msra.gmra.mrb[4].mxu0 %vm266_vm2, %v362_v25  ;;  %942 = vmatmul.mubr.msk.bf16.vlgmr.msra.gmra.mrb[8].mxu1 %vm266_vm2, %v522_v27  ;;  %v740_v25 = vunpack.c.l.bf16 %v739_v20  ;;  %p1050_p7 = pnand %p1049_p6, %p1043_p2 }
  0x30   : > { %934 = vmatpush3.bf16.msra.mxu0 %v477_v30  ;;  %935 = vmatprep.mubr.msk.bf16.mxu0 %vm1137_vm1, %v1136_v2 }
  0x31   : > { %945 = vmatprep.subr.bf16.mxu0 %v1136_v2  ;;  %952 = vmatpush3.bf16.msra.mxu1 %v637_v31 }
  0x32   : > { %953 = vmatprep.mubr.msk.bf16.mxu1 %vm1137_vm1, %v1136_v2 }
  0x37   : > { %936 = vmatmul.mubr.msk.bf16.vlgmr.msra.gmra.mrb[8].mxu0 %vm266_vm2, %v472_v37  ;;  %954 = vmatmul.mubr.msk.bf16.vlgmr.msra.gmra.mrb[12].mxu1 %vm266_vm2, %v632_v38 }
  0x38   : > { %946 = vmatpush3.bf16.msra.mxu0 %v576_v39  ;;  %947 = vmatprep.mubr.msk.bf16.mxu0 %vm1137_vm1, %v1136_v2 }
  0x39   : > { %957 = vmatprep.subr.bf16.mxu0 %v1136_v2 }
  0x3f   : > { %948 = vmatmul.mubr.msk.bf16.vlgmr.msra.gmra.mrb[12].mxu0 %vm266_vm2, %v249_v17 }
  0x40   : > { %958 = vmatpush3.bf16.msra.mxu0 %v687_v41  ;;  %959 = vmatprep.mubr.msk.bf16.mxu0 %vm1137_vm1, %v1136_v2 }
  0x47   : > { %960 = vmatmul.mubr.msk.bf16.vlgmr.msra.gmra.mrb[16].mxu0 %vm266_vm2, %v682_v42 }
  0xf2   : > { %v354_v43 = vpop.f32.mrb[0].mxu1 }
  0xf3   : > { %v919_v44 = vpop.f32.mrb[1].mxu1 }
  0xf4   : > { %v357_v45 = vpop.f32.mrb[2].mxu1 }
  0xf5   : > { %v920_v46 = vpop.f32.mrb[3].mxu1 }
  0xfa   : > { %v308_v47 = vpop.f32.mrb[0].mxu0  ;;  %v452_v48 = vpop.f32.mrb[4].mxu1 }
  0xfb   : > { %v355_v49 = vadd.f32 %v354_v43, %v308_v47  ;;  %v913_v50 = vpop.f32.mrb[1].mxu0  ;;  %v931_v51 = vpop.f32.mrb[5].mxu1 }
  0xfc   : > { %v311_v52 = vpop.f32.mrb[2].mxu0  ;;  %v455_v53 = vpop.f32.mrb[6].mxu1 }
  0xfd   : > { %v914_v54 = vpop.f32.mrb[3].mxu0  ;;  %v932_v55 = vpop.f32.mrb[7].mxu1 }
 0x102   : > { %v403_v56 = vpop.f32.mrb[4].mxu0  ;;  %v563_v57 = vpop.f32.mrb[8].mxu1 }
 0x103   : > { %v409_v58 = vadd.f32 %v403_v56, %v355_v49  ;;  %v925_v59 = vpop.f32.mrb[5].mxu0  ;;  %v943_v60 = vpop.f32.mrb[9].mxu1 }
 0x104   : > { %v406_v61 = vpop.f32.mrb[6].mxu0  ;;  %v566_v62 = vpop.f32.mrb[10].mxu1 }
 0x105   : > { %v458_v63 = vadd.f32 %v452_v48, %v409_v58  ;;  %v926_v0 = vpop.f32.mrb[7].mxu0  ;;  %v944_v1 = vpop.f32.mrb[11].mxu1 }
 0x10a   : > { %v513_v2 = vpop.f32.mrb[8].mxu0  ;;  %v673_v3 = vpop.f32.mrb[12].mxu1 }
 0x10b   : > { %v519_v4 = vadd.f32 %v513_v2, %v458_v63  ;;  %v937_v5 = vpop.f32.mrb[9].mxu0  ;;  %v955_v6 = vpop.f32.mrb[13].mxu1 }
 0x10c   : > { %v516_v7 = vpop.f32.mrb[10].mxu0  ;;  %v676_v8 = vpop.f32.mrb[14].mxu1 }
 0x10d   : > { %v569_v9 = vadd.f32 %v563_v57, %v519_v4  ;;  %v938_v10 = vpop.f32.mrb[11].mxu0  ;;  %v956_v11 = vpop.f32.mrb[15].mxu1 }
 0x112   : > { %v612_v12 = vpop.f32.mrb[12].mxu0 }
 0x113   : > { %v618_v13 = vadd.f32 %v612_v12, %v569_v9  ;;  %v949_v14 = vpop.f32.mrb[13].mxu0 }
 0x114   : > { %v615_v15 = vpop.f32.mrb[14].mxu0 }
 0x115   : > { %v679_v16 = vadd.f32 %v673_v3, %v618_v13  ;;  %v950_v17 = vpop.f32.mrb[15].mxu0 }
 0x11a   : > { %v723_v19 = vpop.f32.mrb[16].mxu0 }
 0x11b   : > { %v729_v21 = vadd.f32 %v723_v19, %v679_v16  ;;  %v961_v22 = vpop.f32.mrb[17].mxu0 }
 0x11c   : > { %v726_v23 = vpop.f32.mrb[18].mxu0 }
 0x11d   : > { %v737_v24 = vadd.f32 %v884_v18, %v729_v21  ;;  %v962_v26 = vpop.f32.mrb[19].mxu0 }
 0x11f   : > { %v738_v27 = vmax.f32 %v737_v24, 0.0 }
 0x121   : > { %v741_v28 = vadd.f32 %v740_v25, %v738_v27 }
 0x123   : > { %v742_v29 = vmax.f32 %v741_v28, 0.0 }
 0x125   : > { %744 = vst.msk [vmem:[%s227_s9] sm:$0xff] %vm743_vm3, %v742_v29 }
 0x126   : > { %1053 = shalt.err (!%p1050_p7)
}
 0x127   : > { %s1054_s24 = scalar_lea.hbm %s1331_s14, 128  ;;  %s1058_s6 = scalar_lea.hbm %s1388_s4, 2048 }
 0x128   : > { %p1055_p9 = scmp.ne.s32.totalorder %s1331_s14, %s1054_s24  ;;  %p1059_p12 = scmp.lt.u32.totalorder %s1331_s14, %s1388_s4 }
 0x129   : > { %p1060_p13 = scmp.lt.u32.totalorder %s1058_s6, %s1054_s24  ;;  %p1062_p1 = scmp.lt.u32.totalorder %s1054_s24, %s1331_s14 }
 0x12a   : > { %p1056_p10 = pnand %p1055_p9, %p1215_p3 }
 0x12b   : > { %p1061_p0 = por %p1060_p13, %p1059_p12 }
 0x12c   : > { %p1057_p11 = pneg %p1056_p10 }
 0x12d   : > { %p1063_p2 = por %p1062_p1, %p1061_p0 }
 0x12f   : > { %p1064_p4 = pnand %p1063_p2, %p1057_p11 }
 0x131   : > { %1067 = shalt.err (!%p1064_p4)
}
 0x132   : > { %964 = dma.vmem_to_hbm [thread:$0]  (%p1215_p3), %s1333_s10, 128, %s1331_s14, %s746_s19  }
 0x133 PF: > { %p970_p5 = scmp.ge.s32.totalorder %s1134_s22, 2  ;;  %s773_s11 = sand.u32 1, %s1106_s15  }
 0x134   : > { %s774_s13 = scalar_lea.sflag [#allocation3], %s773_s11 }
 0x135   : > { %p967_p6 = pnand %p970_p5, %p1224_p8 }
 0x137   : > { %1101 = dma.done.wait (!%p967_p6), %s774_s13, 128  }
 0x138   : > { %1103 = vsyncadd (!%p967_p6), %s774_s13, 4294967168  ;;  %s17_s22 = sadd.s32 1, %s1134_s22   ;;  %s1391_s15 = smov %s1110_s16 }
 0x139   : > { %p14_p7 = scmp.ge.s32.totalorder %s17_s22, 18   ;;  %s1392_s16 = smov %s1114_s17 }
 0x13a   : > { %s1393_s17 = smov %s1233_s7  ;;  %s1394_s18 = smov %s1126_s20 }
 0x13b   : > { %s1395_s19 = smov %s1130_s21  ;;  %s1396_s20 = smov %s1399_s25 }
 0x13c   : > { %s1397_s21 = smov %s1403_s26  ;;  %16 = sbr.rel (!%p14_p7) target bundleno = 5 (0x5), region = 83 }
 0x143   :  { %779 = vsyncpa [#allocation3], 1 }
 0x144   :  { %781 = vsyncpa [#allocation3 + $0x1], 1 }

</bundles_post_ra>
